<compile_context>
chip_gen: v6e
topology: v6e:2x2x1
jax: 0.10.0
libtpu: 0.0.40
codegen_flags: <defaults>
</compile_context>

<pallas_src>
import jax
import jax.numpy as jnp
from jax import lax
from jax.experimental import pallas as pl
from jax.experimental.pallas import tpu as pltpu


# ---------------------------------------------------------------------------
# helpers
# ---------------------------------------------------------------------------
def _resident_spec(shape, index_map):
    """BlockSpec for a constant-index (weight/bias) block.

    Single-buffered when the installed Pallas supports pipeline_mode=Buffered(1):
    constant-index blocks gain nothing from double buffering and halving their
    VMEM footprint matters for large H (f32 W_hh at H=1024 is 16 MiB).
    """
    if hasattr(pl, "Buffered"):
        try:
            return pl.BlockSpec(shape, index_map, pipeline_mode=pl.Buffered(1))
        except Exception:
            pass
    return pl.BlockSpec(shape, index_map)


def _reorder_gates_ifgo_to_ifog(w):
    """Permute last-axis gate blocks from PyTorch (i, f, g, o) to (i, f, o, g)."""
    H = w.shape[-1] // 4
    return jnp.concatenate(
        [w[..., : 2 * H], w[..., 3 * H :], w[..., 2 * H : 3 * H]], axis=-1)


def _pick_row_tile(n, max_bytes_per_buffer, bytes_per_row):
    """Largest divisor of n that is a multiple of 8 and fits the VMEM budget."""
    cap = max(8, min(n, max_bytes_per_buffer // max(1, bytes_per_row)))
    best = 8
    d = 1
    while d * d <= n:
        if n % d == 0:
            for cand in (d, n // d):
                if cand % 8 == 0 and cand <= cap and cand > best:
                    best = cand
        d += 1
    return best


def _vmem_limit(nbytes):
    """Explicit scoped-VMEM request: computed need + headroom, clamped sanely."""
    return int(min(max(nbytes + (8 << 20), 32 << 20), 128 << 20))


# ---------------------------------------------------------------------------
# Phase 1 (parallel): gates_x = ReLU(x @ W_in + b_in) @ W_ih + b_lstm  (all rows)
# ---------------------------------------------------------------------------
def _input_proj_kernel(x_ref, w_in_ref, b_in_ref, w_ih_ref, b_lstm_ref, gx_ref):
    w_in = w_in_ref[...]
    w_ih = w_ih_ref[...]
    xv = x_ref[...].astype(w_in.dtype)
    z = jnp.dot(xv, w_in, preferred_element_type=jnp.float32) + b_in_ref[...]
    z = jnp.maximum(z, 0.0)                      # fcIn ReLU (Dropout = identity, eval)
    g = (jnp.dot(z.astype(w_ih.dtype), w_ih, preferred_element_type=jnp.float32)
         + b_lstm_ref[...])
    gx_ref[...] = g.astype(gx_ref.dtype)         # optionally bf16 (halves HBM traffic)


# ---------------------------------------------------------------------------
# Phase 2 (serial): LSTM recurrence over time chunks; fcOut on last hidden state
# ---------------------------------------------------------------------------
def _make_recurrence_kernel(t_chunk, t_tail, h_dtype):
    """t_tail = number of valid steps in the LAST chunk (static); others do t_chunk."""

    def kernel(gx_ref, w_hh_ref, w_out_ref, b_out_ref, out_ref, h_sc, c_sc):
        chunk = pl.program_id(0)
        last = pl.num_programs(0) - 1
        H = h_sc.shape[-1]

        @pl.when(chunk == 0)
        def _():
            h_sc[...] = jnp.zeros_like(h_sc)
            c_sc[...] = jnp.zeros_like(c_sc)

        w_hh = w_hh_ref[...]

        def step(i, carry):
            # Only the hidden-state matmul remains on the serial critical path.
            gates = gx_ref[i].astype(jnp.float32) + jnp.dot(
                h_sc[...], w_hh, preferred_element_type=jnp.float32)
            # Gate order after host-side permutation: (i, f, o, g).
            #   sigmoid(x) = 0.5*(1 + tanh(0.5*x))  -> one EUP op per element;
            #   tanh only on the (B, H) g-gate slice.
            sg = 0.5 * jnp.tanh(0.5 * gates[:, : 3 * H]) + 0.5
            g_g = jnp.tanh(gates[:, 3 * H :])
            i_g = sg[:, 0 * H : 1 * H]
            f_g = sg[:, 1 * H : 2 * H]
            o_g = sg[:, 2 * H : 3 * H]
            c_new = f_g * c_sc[...] + i_g * g_g
            c_sc[...] = c_new
            h_sc[...] = (o_g * jnp.tanh(c_new)).astype(h_dtype)
            return carry

        if t_tail == t_chunk:
            # T divisible by the chunk: single unguarded unrolled loop.
            lax.fori_loop(0, t_chunk, step, 0, unroll=True)
        else:
            # Full chunks run unguarded; the last chunk runs a statically-sized
            # tail loop -> no per-step scalar compare/branch anywhere.
            @pl.when(chunk != last)
            def _():
                lax.fori_loop(0, t_chunk, step, 0, unroll=True)

            @pl.when(chunk == last)
            def _():
                lax.fori_loop(0, t_tail, step, 0, unroll=True)

        # fcOut on the last hidden state only (matches out[:, -1, :]).
        @pl.when(chunk == last)
        def _():
            w_out = w_out_ref[...]
            out_ref[...] = (jnp.dot(h_sc[...].astype(w_out.dtype), w_out,
                                    preferred_element_type=jnp.float32)
                            + b_out_ref[...])

    return kernel


# ---------------------------------------------------------------------------
# wrapper
# ---------------------------------------------------------------------------
def staparas_lstm_forward(x, params, *, t_chunk=32, use_bf16=False):
    """x: (B, T, inLSTM + 1) float32.  Returns (B, outLSTM) float32.

    params = (w_in (inLSTM,H), b_in (H,), w_ih (H,4H)=W_ih^T, w_hh (H,4H)=W_hh^T,
              b_lstm (4H,)=b_ih+b_hh, w_out (H,O), b_out (O,))
    Biases may be 1-D (PyTorch layout) or (1, dim); gates in PyTorch (i,f,g,o) order.
    """
    w_in, b_in, w_ih, w_hh, b_lstm, w_out, b_out = params
    # Normalize bias shapes at the parameter-conversion boundary.
    b_in = jnp.reshape(b_in, (1, -1)).astype(jnp.float32)
    b_lstm = jnp.reshape(b_lstm, (1, -1)).astype(jnp.float32)
    b_out = jnp.reshape(b_out, (1, -1)).astype(jnp.float32)

    B, T, F_raw = x.shape
    F_in, H = w_in.shape
    O = w_out.shape[1]
    assert F_raw == F_in + 1, "forward drops raw feature index 3"

    # Fold "drop feature index 3" into fcIn by inserting a zero weight row.
    w_in_full = jnp.concatenate(
        [w_in[:3], jnp.zeros((1, H), w_in.dtype), w_in[3:]], axis=0)       # (F_raw, H)

    # Reorder LSTM gates (i,f,g,o) -> (i,f,o,g): sigmoid covers a contiguous 3H block.
    w_ih_p = _reorder_gates_ifgo_to_ifog(w_ih)
    w_hh_p = _reorder_gates_ifgo_to_ifog(w_hh)
    b_lstm_p = _reorder_gates_ifgo_to_ifog(b_lstm)

    wdt = jnp.bfloat16 if use_bf16 else jnp.float32
    gx_dt = jnp.bfloat16 if use_bf16 else jnp.float32
    h_dt = jnp.bfloat16 if use_bf16 else jnp.float32
    wbytes = 2 if use_bf16 else 4
    gx_bytes = 2 if use_bf16 else 4
    h_bytes = 2 if use_bf16 else 4

    w_in_full = w_in_full.astype(wdt)
    w_ih_p = w_ih_p.astype(wdt)
    w_hh_p = w_hh_p.astype(wdt)
    w_out_c = w_out.astype(wdt)

    # Pad batch to a sublane multiple so gate slices / h / c are not sublane-masked.
    b_mult = 16 if use_bf16 else 8
    B_pad = ((B + b_mult - 1) // b_mult) * b_mult

    # Time chunk for the serial recurrence (amortize per-chunk grid overhead),
    # capped so the double-buffered gates_x chunk stays within a modest VMEM budget.
    tck = int(max(1, min(t_chunk, T)))
    max_tc = max(1, (6 << 20) // max(1, B_pad * 4 * H * gx_bytes))
    tck = max(1, min(tck, max_tc))
    n_chunks = -(-T // tck)
    T_pad = n_chunks * tck
    tail = T - (n_chunks - 1) * tck                     # valid steps in last chunk

    # Pad the CHEAP raw input (8 features wide) in time/batch; never pad gates_x.
    x_tm = jnp.transpose(x.astype(jnp.float32), (1, 0, 2))                 # (T, B, F_raw)
    x_tm = jnp.pad(x_tm, ((0, T_pad - T), (0, B_pad - B), (0, 0)))
    x2d = x_tm.reshape(T_pad * B_pad, F_raw)

    # -------- Phase 1: one batched, parallel projection over all rows --------
    N = T_pad * B_pad
    bytes_per_row = F_raw * 4 + H * 4 + 4 * H * 4 + 4 * H * gx_bytes
    row_tile = _pick_row_tile(N, 4 << 20, bytes_per_row)

    vmem1 = _vmem_limit(
        2 * row_tile * (F_raw * 4 + 4 * H * gx_bytes)    # double-buffered in/out blocks
        + row_tile * (H * 4 + 4 * H * 4)                 # z + f32 gate intermediate
        + (F_raw * H + H * 4 * H) * wbytes               # resident weights
        + (H + 4 * H) * 4)                               # biases

    gx2d = pl.pallas_call(
        _input_proj_kernel,
        out_shape=jax.ShapeDtypeStruct((N, 4 * H), gx_dt),
        grid_spec=pltpu.PrefetchScalarGridSpec(
            num_scalar_prefetch=0,
            grid=(N // row_tile,),
            in_specs=[
                pl.BlockSpec((row_tile, F_raw), lambda r: (r, 0)),         # x rows
                _resident_spec((F_raw, H), lambda r: (0, 0)),              # fcIn weight
                _resident_spec((1, H), lambda r: (0, 0)),                  # fcIn bias
                _resident_spec((H, 4 * H), lambda r: (0, 0)),              # LSTM W_ih^T
                _resident_spec((1, 4 * H), lambda r: (0, 0)),              # b_ih + b_hh
            ],
            out_specs=pl.BlockSpec((row_tile, 4 * H), lambda r: (r, 0)),
        ),
        compiler_params=pltpu.CompilerParams(
            dimension_semantics=("parallel",),
            vmem_limit_bytes=vmem1),
    )(x2d, w_in_full, b_in, w_ih_p, b_lstm_p)

    gx = gx2d.reshape(T_pad, B_pad, 4 * H)               # time-major, layout no-op

    # -------- Phase 2: serial recurrence, time chunked inside the kernel --------
    vmem2 = _vmem_limit(
        2 * tck * B_pad * 4 * H * gx_bytes               # double-buffered gx chunk
        + (H * 4 * H + H * O) * wbytes + (4 * H + O) * 4  # resident weights/biases
        + B_pad * H * (h_bytes + 4)                      # h, c state
        + 4 * B_pad * 4 * H * 4                          # gate intermediates
        + 2 * B_pad * O * 4)

    kernel = _make_recurrence_kernel(tck, tail, h_dt)

    out_pad = pl.pallas_call(
        kernel,
        out_shape=jax.ShapeDtypeStruct((B_pad, O), jnp.float32),
        grid_spec=pltpu.PrefetchScalarGridSpec(
            num_scalar_prefetch=0,
            grid=(n_chunks,),
            in_specs=[
                pl.BlockSpec((tck, B_pad, 4 * H), lambda c: (c, 0, 0)),    # gates_x chunk
                _resident_spec((H, 4 * H), lambda c: (0, 0)),              # LSTM W_hh^T
                _resident_spec((H, O), lambda c: (0, 0)),                  # fcOut weight
                _resident_spec((1, O), lambda c: (0, 0)),                  # fcOut bias
            ],
            out_specs=pl.BlockSpec((B_pad, O), lambda c: (0, 0)),          # resident over T
            scratch_shapes=[
                pltpu.VMEM((B_pad, H), h_dt),                              # h (bf16 opt.)
                pltpu.VMEM((B_pad, H), jnp.float32),                       # c (always f32)
            ],
        ),
        compiler_params=pltpu.CompilerParams(
            dimension_semantics=("arbitrary",),                            # time recurrence
            vmem_limit_bytes=vmem2),
    )(gx, w_hh_p, w_out_c, b_out)

    return out_pad[:B]


# ---------------------------------------------------------------------------
# pure-JAX reference (original PyTorch gate order / layout), for sanity checks
# ---------------------------------------------------------------------------
def _reference(x, params):
    w_in, b_in, w_ih, w_hh, b_lstm, w_out, b_out = params
    H = w_in.shape[1]
    x_cat = jnp.concatenate([x[:, :, :3], x[:, :, 4:]], axis=-1)
    z = jnp.maximum(jnp.einsum('btf,fh->bth', x_cat, w_in) + b_in, 0.0)
    B = x.shape[0]
    h = jnp.zeros((B, H), jnp.float32)
    c = jnp.zeros((B, H), jnp.float32)

    def step(carry, zt):
        h, c = carry
        g = zt @ w_ih + h @ w_hh + b_lstm
        i = jax.nn.sigmoid(g[:, :H])
        f = jax.nn.sigmoid(g[:, H:2 * H])
        gg = jnp.tanh(g[:, 2 * H:3 * H])
        o = jax.nn.sigmoid(g[:, 3 * H:])
        c = f * c + i * gg
        h = o * jnp.tanh(c)
        return (h, c), None

    (h, c), _ = jax.lax.scan(step, (h, c), jnp.transpose(z, (1, 0, 2)))
    return h @ w_out + b_out


if __name__ == "__main__":
    # Module hyper-params (small, consistent with the forward pass)
    inLSTM, hidLSTM, outLSTM = 7, 32, 16
    B, T = 2, 8
    raw_feat = inLSTM + 1          # forward drops feature index 3

    key = jax.random.PRNGKey(0)
    ks = jax.random.split(key, 9)
    scale = 0.1
    # Deterministic synthetic parameters (shapes per nn.Linear / nn.LSTM; 1-D biases
    # as PyTorch stores them; b_lstm = b_ih + b_hh pre-summed).
    w_in   = scale * jax.random.normal(ks[0], (inLSTM, hidLSTM), jnp.float32)
    b_in   = scale * jax.random.normal(ks[1], (hidLSTM,), jnp.float32)
    w_ih   = scale * jax.random.normal(ks[2], (hidLSTM, 4 * hidLSTM), jnp.float32)  # W_ih^T
    w_hh   = scale * jax.random.normal(ks[3], (hidLSTM, 4 * hidLSTM), jnp.float32)  # W_hh^T
    b_lstm = scale * jax.random.normal(ks[4], (4 * hidLSTM,), jnp.float32)
    w_out  = scale * jax.random.normal(ks[5], (hidLSTM, outLSTM), jnp.float32)
    b_out  = scale * jax.random.normal(ks[6], (outLSTM,), jnp.float32)
    params = (w_in, b_in, w_ih, w_hh, b_lstm, w_out, b_out)

    x = jax.random.normal(ks[7], (B, T, raw_feat), jnp.float32)
    ref = jax.block_until_ready(_reference(x, params))

    # f32 path (strict)
    out = jax.block_until_ready(staparas_lstm_forward(x, params, use_bf16=False))
    assert out.shape == (B, outLSTM)
    assert jnp.allclose(out, ref, atol=1e-4, rtol=1e-4), "f32 mismatch vs reference"

    # bf16 production path (loose tolerance: bf16 gates/weights, f32 accumulation)
    out_bf16 = jax.block_until_ready(staparas_lstm_forward(x, params, use_bf16=True))
    assert out_bf16.shape == (B, outLSTM)
    assert jnp.allclose(out_bf16, ref, atol=5e-2, rtol=5e-2), "bf16 mismatch vs reference"

    # Non-divisible T exercises the static tail-chunk path (no per-step guard).
    T2 = 11
    x2 = jax.random.normal(ks[8], (B, T2, raw_feat), jnp.float32)
    ref2 = jax.block_until_ready(_reference(x2, params))
    out2 = jax.block_until_ready(
        staparas_lstm_forward(x2, params, t_chunk=4, use_bf16=False))
    assert out2.shape == (B, outLSTM)
    assert jnp.allclose(out2, ref2, atol=1e-4, rtol=1e-4), "tail-chunk mismatch"

    print("KERNEL_OK")
</pallas_src>

<mosaic_0001>
module attributes {stable_mosaic.version = 11 : i64} {
  func.func @_input_proj_kernel(%arg0: i32, %arg1: memref<64x8xf32, #tpu.memory_space<vmem>>, %arg2: memref<8x32xf32, #tpu.memory_space<vmem>>, %arg3: memref<1x32xf32, #tpu.memory_space<vmem>>, %arg4: memref<32x128xf32, #tpu.memory_space<vmem>>, %arg5: memref<1x128xf32, #tpu.memory_space<vmem>>, %arg6: memref<64x128xf32, #tpu.memory_space<vmem>>) attributes {dimension_semantics = [#tpu.dimension_semantics<parallel>], iteration_bounds = array<i64: 1>, scalar_prefetch = 0 : i64, scratch_operands = 0 : i64, tpu.core_type = #tpu.core_type<tc>, window_params = [{transform_indices = @transform_0, window_bounds = array<i64: 64, 8>}, {pipeline_mode = #tpu.pipeline_mode<synchronous>, transform_indices = @transform_1, window_bounds = array<i64: 8, 32>}, {pipeline_mode = #tpu.pipeline_mode<synchronous>, transform_indices = @transform_2, window_bounds = array<i64: 1, 32>}, {pipeline_mode = #tpu.pipeline_mode<synchronous>, transform_indices = @transform_3, window_bounds = array<i64: 32, 128>}, {pipeline_mode = #tpu.pipeline_mode<synchronous>, transform_indices = @transform_4, window_bounds = array<i64: 1, 128>}, {transform_indices = @transform_5, window_bounds = array<i64: 64, 128>}]} {
    %c0 = arith.constant 0 : index
    %c0_0 = arith.constant 0 : index
    %0 = vector.load %arg2[%c0, %c0_0] : memref<8x32xf32, #tpu.memory_space<vmem>>, vector<8x32xf32>
    %c0_1 = arith.constant 0 : index
    %c0_2 = arith.constant 0 : index
    %1 = vector.load %arg4[%c0_1, %c0_2] : memref<32x128xf32, #tpu.memory_space<vmem>>, vector<32x128xf32>
    %c0_3 = arith.constant 0 : index
    %c0_4 = arith.constant 0 : index
    %2 = vector.load %arg1[%c0_3, %c0_4] : memref<64x8xf32, #tpu.memory_space<vmem>>, vector<64x8xf32>
    %cst = arith.constant dense<0.000000e+00> : vector<64x32xf32>
    %3 = tpu.matmul %2, %0, %cst {dimension_numbers = #tpu.dot_dimension_numbers<[1], [0], [0], [1], [0, 0, 1, 1], [], []>} : vector<64x8xf32>, vector<8x32xf32>, vector<64x32xf32> -> vector<64x32xf32>
    %c0_5 = arith.constant 0 : index
    %c0_6 = arith.constant 0 : index
    %4 = vector.load %arg3[%c0_5, %c0_6] : memref<1x32xf32, #tpu.memory_space<vmem>>, vector<1x32xf32>
    %5 = vector.broadcast %4 : vector<1x32xf32> to vector<64x32xf32>
    %6 = arith.addf %3, %5 : vector<64x32xf32>
    %cst_7 = arith.constant 0.000000e+00 : f32
    %7 = vector.broadcast %cst_7 : f32 to vector<64x32xf32>
    %8 = arith.maximumf %6, %7 : vector<64x32xf32>
    %cst_8 = arith.constant dense<0.000000e+00> : vector<64x128xf32>
    %9 = tpu.matmul %8, %1, %cst_8 {dimension_numbers = #tpu.dot_dimension_numbers<[1], [0], [0], [1], [0, 0, 1, 1], [], []>} : vector<64x32xf32>, vector<32x128xf32>, vector<64x128xf32> -> vector<64x128xf32>
    %c0_9 = arith.constant 0 : index
    %c0_10 = arith.constant 0 : index
    %10 = vector.load %arg5[%c0_9, %c0_10] : memref<1x128xf32, #tpu.memory_space<vmem>>, vector<1x128xf32>
    %11 = vector.broadcast %10 : vector<1x128xf32> to vector<64x128xf32>
    %12 = arith.addf %9, %11 : vector<64x128xf32>
    %c0_11 = arith.constant 0 : index
    %c0_12 = arith.constant 0 : index
    %13 = vector.load %arg6[%c0_11, %c0_12] : memref<64x128xf32, #tpu.memory_space<vmem>>, vector<64x128xf32>
    tpu.vector_store %arg6[%c0_11, %c0_12], %12 {strides = array<i32>} : memref<64x128xf32, #tpu.memory_space<vmem>>, vector<64x128xf32>,
    return
  }
  func.func @transform_0(%arg0: i32) -> (i32, i32) {
    %c0_i32 = arith.constant 0 : i32
    %c0_i32_0 = arith.constant 0 : i32
    return %arg0, %c0_i32 : i32, i32
  }
  func.func @transform_1(%arg0: i32) -> (i32, i32) {
    %c0_i32 = arith.constant 0 : i32
    %c0_i32_0 = arith.constant 0 : i32
    %c0_i32_1 = arith.constant 0 : i32
    return %c0_i32, %c0_i32_0 : i32, i32
  }
  func.func @transform_2(%arg0: i32) -> (i32, i32) {
    %c0_i32 = arith.constant 0 : i32
    %c0_i32_0 = arith.constant 0 : i32
    %c0_i32_1 = arith.constant 0 : i32
    return %c0_i32, %c0_i32_0 : i32, i32
  }
  func.func @transform_3(%arg0: i32) -> (i32, i32) {
    %c0_i32 = arith.constant 0 : i32
    %c0_i32_0 = arith.constant 0 : i32
    %c0_i32_1 = arith.constant 0 : i32
    return %c0_i32, %c0_i32_0 : i32, i32
  }
  func.func @transform_4(%arg0: i32) -> (i32, i32) {
    %c0_i32 = arith.constant 0 : i32
    %c0_i32_0 = arith.constant 0 : i32
    %c0_i32_1 = arith.constant 0 : i32
    return %c0_i32, %c0_i32_0 : i32, i32
  }
  func.func @transform_5(%arg0: i32) -> (i32, i32) {
    %c0_i32 = arith.constant 0 : i32
    %c0_i32_0 = arith.constant 0 : i32
    return %arg0, %c0_i32 : i32, i32
  }
}

</mosaic_0001>

<bundles_post_ra>
// kernel: tpu_custom_call.1
= control target key start
LH: loop header
LB: loop body
LE: loop exit
PB: predicated region body
PF: predicated region fallthrough
CT: control target
= control target key end

     0   :  { %vm41_vm0 = vcmask 64512   ;;  %s535_s0 = inlined_call_operand.vmem [shape: f32[64,8], index: 0, kind: input, shape index: {}]   ;;  %s536_s1 = inlined_call_operand.vmem [shape: f32[8,32], index: 1, kind: input, shape index: {}]   ;;  %s537_s2 = inlined_call_operand.vmem [shape: f32[1,32], index: 2, kind: input, shape index: {}]   ;;  %s538_s3 = inlined_call_operand.vmem [shape: f32[32,128], index: 3, kind: input, shape index: {}]   ;;  %s539_s4 = inlined_call_operand.vmem [shape: f32[1,128], index: 4, kind: input, shape index: {}]   ;;  %s540_s5 = inlined_call_operand.hbm [shape: f32[64,128], index: 5, kind: output, shape index: {}]  }
   0x1   :  { %v21_v0 = vld [vmem:[%s536_s1] sm:$0xff]  ;;  %v27_v2 = vld [vmem:[%s535_s0 + $0x8] sm:$0xff]  ;;  %v28_v3 = vld [vmem:[%s535_s0 + $0x10] sm:$0xff] }
   0x2   :  { %v26_v1 = vld [vmem:[%s535_s0] sm:$0xff]  ;;  %379 = vmatprep.subr.mxu0 %v21_v0 }
   0x3   :  { %381 = vmatprep.mubr.msk.f32.mxu0 %vm41_vm0, %v26_v1  ;;  %380 = vmatpush3.msra.mxu0 %v21_v0 }
   0x4   :  { %382 = vmatmul.mubr.msk.f32.vlgmr.msra.gmra.mxu0 %vm41_vm0, %v27_v2 }
   0x5   :  { %10 = vsyncpa [#allocation3], 0  ;;  %384 = vmatprep.mubr.msk.f32.mxu0 %vm41_vm0, %v28_v3  ;;  %v29_v4 = vld [vmem:[%s535_s0 + $0x18] sm:$0xff]  ;;  %v30_v5 = vld [vmem:[%s535_s0 + $0x20] sm:$0xff]  ;;  %vm186_vm1 = vcmask 261120   ;;  %s438_s19 = smov [#allocation2]  }
   0x6   :  { %v31_v6 = vld [vmem:[%s535_s0 + $0x28] sm:$0xff]  ;;  %v32_v7 = vld [vmem:[%s535_s0 + $0x30] sm:$0xff]  ;;  %v33_v8 = vld [vmem:[%s535_s0 + $0x38] sm:$0xff]  ;;  %s329_s20 = sshll.u32 %s438_s19, 4  ;;  %s330_s20 = int_to_ptr.vmem [resolvable:$true] %s329_s20 }
   0x7   :  { %v25_v9 = vld [vmem:[%s538_s3 + $0x18] sm:$0xff]  ;;  %v24_v10 = vld [vmem:[%s538_s3 + $0x10] sm:$0xff]  ;;  %v23_v11 = vld [vmem:[%s538_s3 + $0x8] sm:$0xff]  ;;  %p421_p1 = scmp.lt.s32.totalorder %s330_s20, %s330_s20 }
   0x8   :  { %385 = vmatmul.mubr.msk.f32.gmra.mxu0 %vm41_vm0, %v29_v4  ;;  %393 = vmatprep.subr.mxu1 %v25_v9  ;;  %v22_v12 = vld [vmem:[%s538_s3] sm:$0xff] }
   0x9   :  { %387 = vmatprep.mubr.msk.f32.mxu0 %vm41_vm0, %v30_v5  ;;  %394 = vmatpush3.msra.mxu1 %v25_v9  ;;  %v340_v13 = vld [vmem:[%s537_s2] ss:$0 sm:$0xff] }
   0xa   :  { %395 = vmatprep.subr.mxu1 %v24_v10  ;;  %v349_v38 = vld [vmem:[%s539_s4] ss:$0 sm:$0xff]  ;;  %s416_s4 = scalar_lea.vmem %s330_s20, 1024 }
   0xb   :  { %396 = vmatpush3.msra.mxu1 %v24_v10  ;;  %p417_p0 = scmp.ne.s32.totalorder %s330_s20, %s416_s4  ;;  %p422_p2 = scmp.lt.s32.totalorder %s416_s4, %s416_s4 }
   0xc   :  { %388 = vmatmul.mubr.msk.f32.gmra.mxu0 %vm41_vm0, %v31_v6  ;;  %397 = vmatprep.subr.mxu1 %v23_v11 }
   0xd   :  { %390 = vmatprep.mubr.msk.f32.mxu0 %vm41_vm0, %v32_v7  ;;  %398 = vmatpush3.msra.mxu1 %v23_v11  ;;  %p423_p3 = por %p422_p2, %p421_p1 }
   0xe   :  { %399 = vmatprep.subr.mxu1 %v22_v12 }
   0xf   :  { %400 = vmatpush3.msra.mxu1 %v22_v12  ;;  %p424_p4 = pnand %p423_p3, %p417_p0 }
  0x10   :  { %391 = vmatmul.mubr.msk.f32.gmra.mxu0 %vm41_vm0, %v33_v8 }
  0xc4   :  { %v383_v14 = vpop.f32.mrf.mxu0 }
  0xc5   :  { %v138_v15 = vadd.f32 %v383_v14, %v340_v13 }
  0xc6   :  { %v132_v16 = vpop.f32.mrf.mxu0 }
  0xc7   :  { %v133_v17 = vadd.f32 %v340_v13, %v132_v16  ;;  %v172_v20 = vmax.f32 %v138_v15, 0.0 }
  0xc8   :  { %v386_v18 = vpop.f32.mrf.mxu0 }
  0xc9   :  { %v171_v19 = vmax.f32 %v133_v17, 0.0  ;;  %v148_v21 = vadd.f32 %v386_v18, %v340_v13 }
  0xca   :  { %v142_v22 = vpop.f32.mrf.mxu0 }
  0xcb   :  { %v143_v23 = vadd.f32 %v340_v13, %v142_v22  ;;  %401 = vmatprep.mubr.msk.f32.mxu1 %vm186_vm1, %v171_v19  ;;  %v174_v26 = vmax.f32 %v148_v21, 0.0 }
  0xcc   :  { %v389_v24 = vpop.f32.mrf.mxu0  ;;  %402 = vmatmul.mubr.msk.f32.vlgmr.msra.gmra.mxu1 %vm186_vm1, %v172_v20 }
  0xcd   :  { %v173_v25 = vmax.f32 %v143_v23, 0.0  ;;  %v158_v27 = vadd.f32 %v389_v24, %v340_v13 }
  0xce   :  { %v152_v28 = vpop.f32.mrf.mxu0 }
  0xcf   :  { %v153_v29 = vadd.f32 %v340_v13, %v152_v28  ;;  %404 = vmatprep.mubr.msk.f32.mxu1 %vm186_vm1, %v173_v25  ;;  %v176_v32 = vmax.f32 %v158_v27, 0.0 }
  0xd0   :  { %v392_v30 = vpop.f32.mrf.mxu0  ;;  %405 = vmatmul.mubr.msk.f32.gmra.mxu1 %vm186_vm1, %v174_v26 }
  0xd1   :  { %v175_v31 = vmax.f32 %v153_v29, 0.0  ;;  %v168_v33 = vadd.f32 %v392_v30, %v340_v13 }
  0xd2   :  { %v162_v34 = vpop.f32.mrf.mxu0 }
  0xd3   :  { %v163_v35 = vadd.f32 %v340_v13, %v162_v34  ;;  %407 = vmatprep.mubr.msk.f32.mxu1 %vm186_vm1, %v175_v31  ;;  %v178_v37 = vmax.f32 %v168_v33, 0.0 }
  0xd4   :  { %408 = vmatmul.mubr.msk.f32.gmra.mxu1 %vm186_vm1, %v176_v32 }
  0xd5   :  { %v177_v36 = vmax.f32 %v163_v35, 0.0 }
  0xd7   :  { %410 = vmatprep.mubr.msk.f32.mxu1 %vm186_vm1, %v177_v36 }
  0xd8   :  { %411 = vmatmul.mubr.msk.f32.gmra.mxu1 %vm186_vm1, %v178_v37 }
 0x18c   :  { %v403_v39 = vpop.f32.mrf.mxu1 }
 0x18d   :  { %v283_v40 = vadd.f32 %v403_v39, %v349_v38 }
 0x18e   :  { %v277_v41 = vpop.f32.mrf.mxu1 }
 0x18f   :  { %317 = vst [vmem:[#allocation2 + $0x8] sm:$0xff] %v283_v40  ;;  %v278_v42 = vadd.f32 %v349_v38, %v277_v41 }
 0x190   :  { %v406_v43 = vpop.f32.mrf.mxu1 }
 0x191   :  { %316 = vst [vmem:[#allocation2] sm:$0xff] %v278_v42  ;;  %v293_v44 = vadd.f32 %v406_v43, %v349_v38 }
 0x192   :  { %v287_v45 = vpop.f32.mrf.mxu1 }
 0x193   :  { %319 = vst [vmem:[#allocation2 + $0x18] sm:$0xff] %v293_v44  ;;  %v288_v46 = vadd.f32 %v349_v38, %v287_v45 }
 0x194   :  { %v409_v47 = vpop.f32.mrf.mxu1 }
 0x195   :  { %318 = vst [vmem:[#allocation2 + $0x10] sm:$0xff] %v288_v46  ;;  %v303_v48 = vadd.f32 %v409_v47, %v349_v38 }
 0x196   :  { %v297_v49 = vpop.f32.mrf.mxu1 }
 0x197   :  { %321 = vst [vmem:[#allocation2 + $0x28] sm:$0xff] %v303_v48  ;;  %v298_v50 = vadd.f32 %v349_v38, %v297_v49 }
 0x198   :  { %v412_v51 = vpop.f32.mrf.mxu1 }
 0x199   :  { %320 = vst [vmem:[#allocation2 + $0x20] sm:$0xff] %v298_v50  ;;  %v313_v52 = vadd.f32 %v412_v51, %v349_v38 }
 0x19a   :  { %v307_v53 = vpop.f32.mrf.mxu1 }
 0x19b   :  { %323 = vst [vmem:[#allocation2 + $0x38] sm:$0xff] %v313_v52  ;;  %v308_v54 = vadd.f32 %v349_v38, %v307_v53 }
 0x19d   :  { %322 = vst [vmem:[#allocation2 + $0x30] sm:$0xff] %v308_v54 }
 0x19e   :  { %427 = shalt.err (!%p424_p4)
}
 0x19f   :  { %s439_s21 = smov 128   ;;  %s440_s22 = smov 8  }
 0x1a0   :  { %335 = dma.vmem_to_hbm [thread:$0]  %s330_s20, 1024, %s540_s5, [#allocation3], %s439_s21, %s439_s21, %s440_s22  }
 0x1a1   :  { %436 = dma.done.wait [#allocation3], 1024  }
 0x1a2   :  { %437 = vsyncadd [#allocation3], 4294966272 }
 0x1a3   :  { %339 = vsyncpa [#allocation3], 1 }

</bundles_post_ra>
